<compile_context>
chip_gen: v6e
topology: v6e:2x2x1
jax: 0.10.0
libtpu: 0.0.40
codegen_flags: <defaults>
</compile_context>

<pallas_src>
import math
import functools

import numpy as np
import jax
import jax.numpy as jnp
from jax.experimental import pallas as pl
from jax.experimental.pallas import tpu as pltpu


def _round_up(x, m):
    return ((x + m - 1) // m) * m


def _criterion_stats_kernel(x_ref, code_ref,
                            sel_o, int_o, asum_o, bsum_o,
                            sel_a, int_a, asum_a, bsum_a):
    """Masked per-slot statistics, accumulated over the batch tiles of one half.

    x_ref    : (tbf, W) f32 log-probs, (k-fold, au, class) interleaved on lanes
    code_ref : (tbf, W) int8 slot code: 0 invalid, 1 valid, 2 valid & true class
    outputs  : 4 x (1, 1, W) f32 per-half sums, written once on the last step
    scratch  : 4 x (tbf, W) f32 element-wise accumulators (XLU only at finalize)
    """
    step = pl.program_id(1)

    @pl.when(step == 0)
    def _init():
        sel_a[...] = jnp.zeros_like(sel_a)
        int_a[...] = jnp.zeros_like(int_a)
        asum_a[...] = jnp.zeros_like(asum_a)
        bsum_a[...] = jnp.zeros_like(bsum_a)

    c = code_ref[...].astype(jnp.float32)      # values in {0, 1, 2}
    m = jnp.minimum(c, 1.0)                    # validity mask
    mt = c - m                                 # valid AND true-class slot
    # Select before use: rows of x beyond the real data (partial last block)
    # are unspecified, and a masked sample's log-prob may legitimately be
    # -inf; selecting 0 first avoids 0*inf / NaN poisoning the accumulators.
    x = jnp.where(c > 0.0, x_ref[...], 0.0)
    p = jnp.exp(x)                             # EUP; only class-1 slots consumed
    mp = m * p

    sel_a[...] += mt * x      # sum log p(true class)          (both class slots)
    int_a[...] += mt * p      # class-1 slot: sum gt * p1
    asum_a[...] += mp * p     # class-1 slot: sum p1 * p1
    bsum_a[...] += mt         # class-1: sum gt; both slots together: sum mask

    @pl.when(step == pl.num_programs(1) - 1)
    def _finalize():
        sel_o[...] = jnp.sum(sel_a[...], axis=0, keepdims=True)[None]
        int_o[...] = jnp.sum(int_a[...], axis=0, keepdims=True)[None]
        asum_o[...] = jnp.sum(asum_a[...], axis=0, keepdims=True)[None]
        bsum_o[...] = jnp.sum(bsum_a[...], axis=0, keepdims=True)[None]


@functools.partial(jax.jit, static_argnames=("tbf_max",))
def criterion_pallas(output, aus_gt, masks, au_weights=None, *, tbf_max=4096):
    """Criterion forward (losses = ['softmax', 'dice']).

    output : (B, A, 2) log-probabilities;  aus_gt : (B, A) int in {0, 1}
    masks  : (B, A) bool;  au_weights : optional (A,) weights.
    """
    B, A, C = output.shape
    assert C == 2
    C2 = 2 * A

    # ---- lane folding: make the kernel's last dim a multiple of 128 ----
    k_lcm = 128 // math.gcd(C2, 128)
    if C2 * k_lcm <= 4096:
        k = k_lcm                          # W is a multiple of 128 (lane-dense)
    else:
        k = max(1, -(-128 // C2))          # TODO(synk): lane-pad for huge odd A
    W = C2 * k

    # ---- generation-aware VMEM budget (128 MiB on v5e/v6e, 64 MiB on v7x) ----
    try:
        vmem_cap = int(pltpu.get_tpu_info().vmem_capacity_bytes)
    except Exception:
        vmem_cap = 64 * 1024 * 1024        # v7x-safe fallback
    vmem_cap = min(max(vmem_cap, 32 << 20), 128 << 20)
    budget = (vmem_cap * 6) // 10
    # per folded row of one tile: double-buffered inputs (f32 + int8) + 4 f32 accs
    bytes_per_row = (2 * (4 + 1) + 4 * 4) * W
    tbf_cap = max(32, ((budget // bytes_per_row) // 32) * 32)
    tbf_lim = max(32, (min(int(tbf_max), tbf_cap) // 32) * 32)

    # ---- grid decomposition over folded batch rows ----
    Bf0 = -(-B // k)                       # folded rows containing real data
    if Bf0 <= tbf_lim:
        tbf, nh, nt = _round_up(Bf0, 32), 1, 1
    else:
        tbf = tbf_lim
        nt_total = -(-Bf0 // tbf)
        # 2nd TensorCore (v7x) only when each half gets >= 2 full tiles and the
        # split is even, so no grid block is ever fully out of range of x.
        nh = 2 if (nt_total >= 4 and nt_total % 2 == 0) else 1
        nt = nt_total // nh
    Bf = nh * nt * tbf                     # folded rows covered by the grid

    # ---- f32 log-probs: free reshape, pad only when the fold requires it ----
    x2 = output.reshape(B, C2).astype(jnp.float32)
    rows_x = max(Bf0, 8) * k
    if rows_x != B:
        # TODO(synk): avoid this copy entirely for B % k != 0 (tail handled
        # separately); when B already divides k there is no copy at all.
        x2 = jnp.pad(x2, ((0, rows_x - B), (0, 0)))
    x2 = x2.reshape(rows_x // k, W)

    # ---- single int8 side stream: 0 invalid, 1 valid, 2 valid & true class ----
    g8 = aus_gt.astype(jnp.int8)
    m8 = masks.astype(jnp.int8)
    code = (m8[:, :, None] * (1 + jnp.stack([1 - g8, g8], axis=-1))).astype(jnp.int8)
    code = code.reshape(B, C2)
    rows_code = Bf * k                     # fully padded (cheap: 1 byte/slot)
    if rows_code != B:
        code = jnp.pad(code, ((0, rows_code - B), (0, 0)))
    code = code.reshape(Bf, W)

    in_spec = pl.BlockSpec((tbf, W), lambda h, t: (h * nt + t, 0))
    out_spec = pl.BlockSpec((1, 1, W), lambda h, t: (h, 0, 0))
    out_shape = tuple(jax.ShapeDtypeStruct((nh, 1, W), jnp.float32)
                      for _ in range(4))

    vmem_limit = bytes_per_row * tbf + (6 << 20)
    vmem_limit = int(min(max(vmem_limit, 32 << 20), vmem_cap - (2 << 20)))

    sel, inter, a_sum, b_sum = pl.pallas_call(
        _criterion_stats_kernel,
        out_shape=out_shape,
        grid_spec=pltpu.PrefetchScalarGridSpec(
            num_scalar_prefetch=0,
            grid=(nh, nt),
            in_specs=[in_spec, in_spec],
            out_specs=(out_spec,) * 4,
            scratch_shapes=[pltpu.VMEM((tbf, W), jnp.float32)] * 4),
        compiler_params=pltpu.CompilerParams(
            dimension_semantics=("parallel", "arbitrary"),
            vmem_limit_bytes=vmem_limit),
    )(x2, code)

    # ---- tiny (A,)-sized epilogue: fold halves / k lane-folds / 2 class slots ----
    def fold(v, cls=None):
        v = v.reshape(nh, k, A, 2)
        return v.sum(axis=(0, 1, 3)) if cls is None else v[..., cls].sum(axis=(0, 1))

    sel_sum = fold(sel)              # sum log p(true class) over valid samples
    count = fold(b_sum)              # valid samples per AU (both class slots = mask)
    b_s = fold(b_sum, cls=1)         # sum gt
    inter_s = fold(inter, cls=1)     # sum gt * p1
    a_s = fold(a_sum, cls=1)         # sum p1 * p1

    if au_weights is None:
        w = jnp.ones((A,), jnp.float32)
    else:
        w = jnp.asarray(au_weights, jnp.float32).reshape(A)

    has = count > 0.0                # AUs with >= 1 valid sample
    safe = jnp.where(has, count, 1.0)
    sm_au = -(sel_sum / safe) * w                                   # F.nll_loss
    dice_au = (1.0 - (2.0 * inter_s + 1.0)
               / (a_s + b_s + 1.0) / safe) * w                      # dice_coef_loss

    n_inc = jnp.sum(has.astype(jnp.float32))   # NaN if empty, like torch.mean([])
    return {"softmax_loss": jnp.sum(jnp.where(has, sm_au, 0.0)) / n_inc,
            "dice_loss": jnp.sum(jnp.where(has, dice_au, 0.0)) / n_inc}


def reference_numpy(output, aus_gt, masks, au_weights):
    """Direct port of the PyTorch Criterion forward (loops + boolean indexing)."""
    output = np.asarray(output, dtype=np.float64)
    aus_gt = np.asarray(aus_gt)
    masks = np.asarray(masks)
    sm_list, dice_list = [], []
    for i in range(output.shape[1]):
        valid = masks[:, i]
        gt = aus_gt[valid, i]
        pred = output[valid, i, :]
        if gt.size == 0:
            continue
        nll = -np.mean(pred[np.arange(gt.size), gt])
        sm_list.append(nll * au_weights[i])
        p = np.exp(output[valid, i, 1])
        gf = gt.astype(np.float64)
        inter = np.sum(p * gf)
        a_sum = np.sum(p * p)
        b_sum = np.sum(gf * gf)
        d = 1.0 - (2.0 * inter + 1.0) / (a_sum + b_sum + 1.0) / p.shape[0]
        dice_list.append(d * au_weights[i])
    return float(np.mean(sm_list)), float(np.mean(dice_list))


if __name__ == "__main__":
    def run_case(case_key, B, A, tbf_max):
        k1, k2, k3 = jax.random.split(case_key, 3)
        logits = jax.random.normal(k1, (B, A, 2), dtype=jnp.float32)
        output = jax.nn.log_softmax(logits, axis=-1)            # (B, A, 2) log-probs
        aus_gt = jax.random.bernoulli(k2, 0.5, (B, A)).astype(jnp.int32)
        masks = jax.random.bernoulli(k3, 0.7, (B, A))           # bool (B, A)
        au_w = 1.0 + 0.1 * jnp.arange(A, dtype=jnp.float32)

        losses = criterion_pallas(output, aus_gt, masks, au_w, tbf_max=tbf_max)
        losses = jax.block_until_ready(losses)

        ref_sm, ref_dice = reference_numpy(np.asarray(output), np.asarray(aus_gt),
                                           np.asarray(masks), np.asarray(au_w))
        assert abs(float(losses["softmax_loss"]) - ref_sm) < 1e-4, (losses, ref_sm)
        assert abs(float(losses["dice_loss"]) - ref_dice) < 1e-4, (losses, ref_dice)

    key = jax.random.PRNGKey(0)
    k1, k2, k3 = jax.random.split(key, 3)
    # (a) whole batch in one lane-dense tile (extra tile rows masked by code=0).
    run_case(k1, B=16, A=8, tbf_max=4096)
    # (b) multi-tile path: padded f32 rows + partial last block (small tiles forced).
    run_case(k2, B=1200, A=6, tbf_max=32)
    # (c) 2-way parallel halves, no f32 padding at all (B divides k * tbf * nt).
    run_case(k3, B=4096, A=6, tbf_max=32)

    print("KERNEL_OK")
</pallas_src>

<mosaic_0001>
module attributes {stable_mosaic.version = 11 : i64} {
  func.func @_criterion_stats_kernel(%arg0: i32, %arg1: i32, %arg2: memref<32x128xf32, #tpu.memory_space<vmem>>, %arg3: memref<32x128xi8, #tpu.memory_space<vmem>>, %arg4: memref<1x1x128xf32, #tpu.memory_space<vmem>>, %arg5: memref<1x1x128xf32, #tpu.memory_space<vmem>>, %arg6: memref<1x1x128xf32, #tpu.memory_space<vmem>>, %arg7: memref<1x1x128xf32, #tpu.memory_space<vmem>>, %arg8: memref<32x128xf32, #tpu.memory_space<vmem>>, %arg9: memref<32x128xf32, #tpu.memory_space<vmem>>, %arg10: memref<32x128xf32, #tpu.memory_space<vmem>>, %arg11: memref<32x128xf32, #tpu.memory_space<vmem>>) attributes {dimension_semantics = [#tpu.dimension_semantics<parallel>, #tpu.dimension_semantics<arbitrary>], iteration_bounds = array<i64: 1, 1>, scalar_prefetch = 0 : i64, scratch_operands = 4 : i64, tpu.core_type = #tpu.core_type<tc>, window_params = [{transform_indices = @transform_0, window_bounds = array<i64: 32, 128>}, {transform_indices = @transform_1, window_bounds = array<i64: 32, 128>}, {transform_indices = @transform_2, window_bounds = array<i64: 1, 1, 128>}, {transform_indices = @transform_3, window_bounds = array<i64: 1, 1, 128>}, {transform_indices = @transform_4, window_bounds = array<i64: 1, 1, 128>}, {transform_indices = @transform_5, window_bounds = array<i64: 1, 1, 128>}]} {
    %c0_i32 = arith.constant 0 : i32
    %0 = arith.cmpi eq, %arg1, %c0_i32 : i32
    %1 = arith.extui %0 : i1 to i32
    %c0_i32_0 = arith.constant 0 : i32
    %2 = arith.cmpi ne, %1, %c0_i32_0 : i32
    scf.if %2 {
      %cst_24 = arith.constant 0.000000e+00 : f32
      %33 = vector.broadcast %cst_24 : f32 to vector<32x128xf32>
      %c0_25 = arith.constant 0 : index
      %c0_26 = arith.constant 0 : index
      %34 = vector.load %arg8[%c0_25, %c0_26] : memref<32x128xf32, #tpu.memory_space<vmem>>, vector<32x128xf32>
      tpu.vector_store %arg8[%c0_25, %c0_26], %33 {strides = array<i32>} : memref<32x128xf32, #tpu.memory_space<vmem>>, vector<32x128xf32>,
      %cst_27 = arith.constant 0.000000e+00 : f32
      %35 = vector.broadcast %cst_27 : f32 to vector<32x128xf32>
      %c0_28 = arith.constant 0 : index
      %c0_29 = arith.constant 0 : index
      %36 = vector.load %arg9[%c0_28, %c0_29] : memref<32x128xf32, #tpu.memory_space<vmem>>, vector<32x128xf32>
      tpu.vector_store %arg9[%c0_28, %c0_29], %35 {strides = array<i32>} : memref<32x128xf32, #tpu.memory_space<vmem>>, vector<32x128xf32>,
      %cst_30 = arith.constant 0.000000e+00 : f32
      %37 = vector.broadcast %cst_30 : f32 to vector<32x128xf32>
      %c0_31 = arith.constant 0 : index
      %c0_32 = arith.constant 0 : index
      %38 = vector.load %arg10[%c0_31, %c0_32] : memref<32x128xf32, #tpu.memory_space<vmem>>, vector<32x128xf32>
      tpu.vector_store %arg10[%c0_31, %c0_32], %37 {strides = array<i32>} : memref<32x128xf32, #tpu.memory_space<vmem>>, vector<32x128xf32>,
      %cst_33 = arith.constant 0.000000e+00 : f32
      %39 = vector.broadcast %cst_33 : f32 to vector<32x128xf32>
      %c0_34 = arith.constant 0 : index
      %c0_35 = arith.constant 0 : index
      %40 = vector.load %arg11[%c0_34, %c0_35] : memref<32x128xf32, #tpu.memory_space<vmem>>, vector<32x128xf32>
      tpu.vector_store %arg11[%c0_34, %c0_35], %39 {strides = array<i32>} : memref<32x128xf32, #tpu.memory_space<vmem>>, vector<32x128xf32>,
    } else {
    }
    %c0 = arith.constant 0 : index
    %c0_1 = arith.constant 0 : index
    %3 = vector.load %arg3[%c0, %c0_1] : memref<32x128xi8, #tpu.memory_space<vmem>>, vector<32x128xi8>
    %4 = arith.sitofp %3 : vector<32x128xi8> to vector<32x128xf32>
    %cst = arith.constant 1.000000e+00 : f32
    %5 = vector.broadcast %cst : f32 to vector<32x128xf32>
    %6 = arith.minimumf %4, %5 : vector<32x128xf32>
    %7 = arith.subf %4, %6 : vector<32x128xf32>
    %cst_2 = arith.constant 0.000000e+00 : f32
    %8 = vector.broadcast %cst_2 : f32 to vector<32x128xf32>
    %9 = arith.cmpf ogt, %4, %8 : vector<32x128xf32>
    %c0_3 = arith.constant 0 : index
    %c0_4 = arith.constant 0 : index
    %10 = vector.load %arg2[%c0_3, %c0_4] : memref<32x128xf32, #tpu.memory_space<vmem>>, vector<32x128xf32>
    %cst_5 = arith.constant 0.000000e+00 : f32
    %11 = vector.broadcast %cst_5 : f32 to vector<32x128xf32>
    %12 = arith.select %9, %10, %11 : vector<32x128xi1>, vector<32x128xf32>
    %13 = math.exp %12 : vector<32x128xf32>
    %14 = arith.mulf %6, %13 : vector<32x128xf32>
    %c0_6 = arith.constant 0 : index
    %c0_7 = arith.constant 0 : index
    %15 = vector.load %arg8[%c0_6, %c0_7] : memref<32x128xf32, #tpu.memory_space<vmem>>, vector<32x128xf32>
    %16 = arith.mulf %7, %12 : vector<32x128xf32>
    %17 = arith.addf %15, %16 : vector<32x128xf32>
    %c0_8 = arith.constant 0 : index
    %c0_9 = arith.constant 0 : index
    %18 = vector.load %arg8[%c0_8, %c0_9] : memref<32x128xf32, #tpu.memory_space<vmem>>, vector<32x128xf32>
    tpu.vector_store %arg8[%c0_8, %c0_9], %17 {strides = array<i32>} : memref<32x128xf32, #tpu.memory_space<vmem>>, vector<32x128xf32>,
    %c0_10 = arith.constant 0 : index
    %c0_11 = arith.constant 0 : index
    %19 = vector.load %arg9[%c0_10, %c0_11] : memref<32x128xf32, #tpu.memory_space<vmem>>, vector<32x128xf32>
    %20 = arith.mulf %7, %13 : vector<32x128xf32>
    %21 = arith.addf %19, %20 : vector<32x128xf32>
    %c0_12 = arith.constant 0 : index
    %c0_13 = arith.constant 0 : index
    %22 = vector.load %arg9[%c0_12, %c0_13] : memref<32x128xf32, #tpu.memory_space<vmem>>, vector<32x128xf32>
    tpu.vector_store %arg9[%c0_12, %c0_13], %21 {strides = array<i32>} : memref<32x128xf32, #tpu.memory_space<vmem>>, vector<32x128xf32>,
    %c0_14 = arith.constant 0 : index
    %c0_15 = arith.constant 0 : index
    %23 = vector.load %arg10[%c0_14, %c0_15] : memref<32x128xf32, #tpu.memory_space<vmem>>, vector<32x128xf32>
    %24 = arith.mulf %14, %13 : vector<32x128xf32>
    %25 = arith.addf %23, %24 : vector<32x128xf32>
    %c0_16 = arith.constant 0 : index
    %c0_17 = arith.constant 0 : index
    %26 = vector.load %arg10[%c0_16, %c0_17] : memref<32x128xf32, #tpu.memory_space<vmem>>, vector<32x128xf32>
    tpu.vector_store %arg10[%c0_16, %c0_17], %25 {strides = array<i32>} : memref<32x128xf32, #tpu.memory_space<vmem>>, vector<32x128xf32>,
    %c0_18 = arith.constant 0 : index
    %c0_19 = arith.constant 0 : index
    %27 = vector.load %arg11[%c0_18, %c0_19] : memref<32x128xf32, #tpu.memory_space<vmem>>, vector<32x128xf32>
    %28 = arith.addf %27, %7 : vector<32x128xf32>
    %c0_20 = arith.constant 0 : index
    %c0_21 = arith.constant 0 : index
    %29 = vector.load %arg11[%c0_20, %c0_21] : memref<32x128xf32, #tpu.memory_space<vmem>>, vector<32x128xf32>
    tpu.vector_store %arg11[%c0_20, %c0_21], %28 {strides = array<i32>} : memref<32x128xf32, #tpu.memory_space<vmem>>, vector<32x128xf32>,
    %c0_i32_22 = arith.constant 0 : i32
    %30 = arith.cmpi eq, %arg1, %c0_i32_22 : i32
    %31 = arith.extui %30 : i1 to i32
    %c0_i32_23 = arith.constant 0 : i32
    %32 = arith.cmpi ne, %31, %c0_i32_23 : i32
    scf.if %32 {
      %c0_24 = arith.constant 0 : index
      %c0_25 = arith.constant 0 : index
      %33 = vector.load %arg8[%c0_24, %c0_25] : memref<32x128xf32, #tpu.memory_space<vmem>>, vector<32x128xf32>
      %cst_26 = arith.constant dense<0.000000e+00> : vector<128xf32>
      %34 = vector.multi_reduction <add>, %33, %cst_26 [0] : vector<32x128xf32> to vector<128xf32>
      %35 = vector.shape_cast %34 : vector<128xf32> to vector<1x128xf32>
      %36 = vector.shape_cast %35 : vector<1x128xf32> to vector<1x1x128xf32>
      %c0_27 = arith.constant 0 : index
      %c0_28 = arith.constant 0 : index
      %c0_29 = arith.constant 0 : index
      %37 = vector.load %arg4[%c0_27, %c0_28, %c0_29] : memref<1x1x128xf32, #tpu.memory_space<vmem>>, vector<1x1x128xf32>
      tpu.vector_store %arg4[%c0_27, %c0_28, %c0_29], %36 {strides = array<i32>} : memref<1x1x128xf32, #tpu.memory_space<vmem>>, vector<1x1x128xf32>,
      %c0_30 = arith.constant 0 : index
      %c0_31 = arith.constant 0 : index
      %38 = vector.load %arg9[%c0_30, %c0_31] : memref<32x128xf32, #tpu.memory_space<vmem>>, vector<32x128xf32>
      %cst_32 = arith.constant dense<0.000000e+00> : vector<128xf32>
      %39 = vector.multi_reduction <add>, %38, %cst_32 [0] : vector<32x128xf32> to vector<128xf32>
      %40 = vector.shape_cast %39 : vector<128xf32> to vector<1x128xf32>
      %41 = vector.shape_cast %40 : vector<1x128xf32> to vector<1x1x128xf32>
      %c0_33 = arith.constant 0 : index
      %c0_34 = arith.constant 0 : index
      %c0_35 = arith.constant 0 : index
      %42 = vector.load %arg5[%c0_33, %c0_34, %c0_35] : memref<1x1x128xf32, #tpu.memory_space<vmem>>, vector<1x1x128xf32>
      tpu.vector_store %arg5[%c0_33, %c0_34, %c0_35], %41 {strides = array<i32>} : memref<1x1x128xf32, #tpu.memory_space<vmem>>, vector<1x1x128xf32>,
      %c0_36 = arith.constant 0 : index
      %c0_37 = arith.constant 0 : index
      %43 = vector.load %arg10[%c0_36, %c0_37] : memref<32x128xf32, #tpu.memory_space<vmem>>, vector<32x128xf32>
      %cst_38 = arith.constant dense<0.000000e+00> : vector<128xf32>
      %44 = vector.multi_reduction <add>, %43, %cst_38 [0] : vector<32x128xf32> to vector<128xf32>
      %45 = vector.shape_cast %44 : vector<128xf32> to vector<1x128xf32>
      %46 = vector.shape_cast %45 : vector<1x128xf32> to vector<1x1x128xf32>
      %c0_39 = arith.constant 0 : index
      %c0_40 = arith.constant 0 : index
      %c0_41 = arith.constant 0 : index
      %47 = vector.load %arg6[%c0_39, %c0_40, %c0_41] : memref<1x1x128xf32, #tpu.memory_space<vmem>>, vector<1x1x128xf32>
      tpu.vector_store %arg6[%c0_39, %c0_40, %c0_41], %46 {strides = array<i32>} : memref<1x1x128xf32, #tpu.memory_space<vmem>>, vector<1x1x128xf32>,
      %c0_42 = arith.constant 0 : index
      %c0_43 = arith.constant 0 : index
      %48 = vector.load %arg11[%c0_42, %c0_43] : memref<32x128xf32, #tpu.memory_space<vmem>>, vector<32x128xf32>
      %cst_44 = arith.constant dense<0.000000e+00> : vector<128xf32>
      %49 = vector.multi_reduction <add>, %48, %cst_44 [0] : vector<32x128xf32> to vector<128xf32>
      %50 = vector.shape_cast %49 : vector<128xf32> to vector<1x128xf32>
      %51 = vector.shape_cast %50 : vector<1x128xf32> to vector<1x1x128xf32>
      %c0_45 = arith.constant 0 : index
      %c0_46 = arith.constant 0 : index
      %c0_47 = arith.constant 0 : index
      %52 = vector.load %arg7[%c0_45, %c0_46, %c0_47] : memref<1x1x128xf32, #tpu.memory_space<vmem>>, vector<1x1x128xf32>
      tpu.vector_store %arg7[%c0_45, %c0_46, %c0_47], %51 {strides = array<i32>} : memref<1x1x128xf32, #tpu.memory_space<vmem>>, vector<1x1x128xf32>,
    } else {
    }
    return
  }
  func.func @transform_0(%arg0: i32, %arg1: i32) -> (i32, i32) {
    %c1_i32 = arith.constant 1 : i32
    %0 = arith.muli %arg0, %c1_i32 : i32
    %1 = arith.addi %0, %arg1 : i32
    %c0_i32 = arith.constant 0 : i32
    %c0_i32_0 = arith.constant 0 : i32
    return %1, %c0_i32 : i32, i32
  }
  func.func @transform_1(%arg0: i32, %arg1: i32) -> (i32, i32) {
    %c1_i32 = arith.constant 1 : i32
    %0 = arith.muli %arg0, %c1_i32 : i32
    %1 = arith.addi %0, %arg1 : i32
    %c0_i32 = arith.constant 0 : i32
    %c0_i32_0 = arith.constant 0 : i32
    return %1, %c0_i32 : i32, i32
  }
  func.func @transform_2(%arg0: i32, %arg1: i32) -> (i32, i32, i32) {
    %c0_i32 = arith.constant 0 : i32
    %c0_i32_0 = arith.constant 0 : i32
    %c0_i32_1 = arith.constant 0 : i32
    return %arg0, %c0_i32, %c0_i32_0 : i32, i32, i32
  }
  func.func @transform_3(%arg0: i32, %arg1: i32) -> (i32, i32, i32) {
    %c0_i32 = arith.constant 0 : i32
    %c0_i32_0 = arith.constant 0 : i32
    %c0_i32_1 = arith.constant 0 : i32
    return %arg0, %c0_i32, %c0_i32_0 : i32, i32, i32
  }
  func.func @transform_4(%arg0: i32, %arg1: i32) -> (i32, i32, i32) {
    %c0_i32 = arith.constant 0 : i32
    %c0_i32_0 = arith.constant 0 : i32
    %c0_i32_1 = arith.constant 0 : i32
    return %arg0, %c0_i32, %c0_i32_0 : i32, i32, i32
  }
  func.func @transform_5(%arg0: i32, %arg1: i32) -> (i32, i32, i32) {
    %c0_i32 = arith.constant 0 : i32
    %c0_i32_0 = arith.constant 0 : i32
    %c0_i32_1 = arith.constant 0 : i32
    return %arg0, %c0_i32, %c0_i32_0 : i32, i32, i32
  }
}

</mosaic_0001>

<bundles_post_ra>
// kernel: criterion_pallas.1
= control target key start
LH: loop header
LB: loop body
LE: loop exit
PB: predicated region body
PF: predicated region fallthrough
CT: control target
= control target key end

     0   :  { %s342_s1 = inlined_call_operand.vmem [shape: s8[32,128], index: 1, kind: input, shape index: {}]   ;;  %s343_s0 = inlined_call_operand.vmem [shape: f32[8,128], index: 0, kind: input, shape index: {}]   ;;  %s344_s5 = inlined_call_operand.vmem [shape: f32[1,1,128], index: 5, kind: output, shape index: {3}]   ;;  %s345_s2 = inlined_call_operand.vmem [shape: f32[1,1,128], index: 2, kind: output, shape index: {0}]   ;;  %s346_s3 = inlined_call_operand.vmem [shape: f32[1,1,128], index: 3, kind: output, shape index: {1}]   ;;  %s347_s4 = inlined_call_operand.vmem [shape: f32[1,1,128], index: 4, kind: output, shape index: {2}]  }
   0x1   :  { %v84_v0 = vld [vmem:[%s342_s1] sm:$0xff]  ;;  %v106_v10 = vld [vmem:[%s343_s0 + $0x8] sm:$0xff]  ;;  %v107_v15 = vld [vmem:[%s343_s0 + $0x10] sm:$0xff] }
   0x2   :  { %v85_v1 = vunpack.c.0.s8 %v84_v0  ;;  %v86_v2 = vunpack.c.1.s8 %v84_v0  ;;  %v87_v3 = vunpack.c.2.s8 %v84_v0  ;;  %v88_v4 = vunpack.c.3.s8 %v84_v0  ;;  %v105_v9 = vld [vmem:[%s343_s0] sm:$0xff]  ;;  %v108_v16 = vld [vmem:[%s343_s0 + $0x18] sm:$0xff] }
   0x4   :  { %v89_v5 = vcvt.s32.f32 %v85_v1  ;;  %v90_v6 = vcvt.s32.f32 %v86_v2  ;;  %v91_v7 = vcvt.s32.f32 %v87_v3  ;;  %v313_v8 = vcvt.s32.f32 %v88_v4 }
   0x6   :  { %v93_v11 = vmin.f32 %v89_v5, 1.0  ;;  %v94_v12 = vmin.f32 %v90_v6, 1.0  ;;  %v95_v13 = vmin.f32 %v91_v7, 1.0  ;;  %v96_v14 = vmin.f32 %v313_v8, 1.0 }
   0x7   :  { %vm101_vm0 = vcmp.gt.f32.partialorder %v89_v5, 0.0  ;;  %vm102_vm1 = vcmp.gt.f32.partialorder %v90_v6, 0.0  ;;  %vm103_vm2 = vcmp.gt.f32.partialorder %v91_v7, 0.0  ;;  %vm104_vm3 = vcmp.gt.f32.partialorder %v313_v8, 0.0 }
   0x8   :  { %v97_v17 = vsub.f32 %v89_v5, %v93_v11  ;;  %v98_v18 = vsub.f32 %v90_v6, %v94_v12  ;;  %v99_v19 = vsub.f32 %v91_v7, %v95_v13  ;;  %v100_v20 = vsub.f32 %v313_v8, %v96_v14 }
   0x9   :  { %v109_v21 = vsel %vm101_vm0, %v105_v9, 0.0  ;;  %v110_v22 = vsel %vm102_vm1, %v106_v10, 0.0  ;;  %v111_v23 = vsel %vm103_vm2, %v107_v15, 0.0  ;;  %v112_v24 = vsel %vm104_vm3, %v108_v16, 0.0 }
   0xa   :  { %v113_v25 = vmul.f32 1.442695, %v109_v21  ;;  %v115_v26 = vmul.f32 1.442695, %v110_v22  ;;  %v117_v27 = vmul.f32 1.442695, %v111_v23  ;;  %v129_v28 = vmul.f32 %v109_v21, %v97_v17 }
   0xb   :  { %v119_v29 = vmul.f32 1.442695, %v112_v24  ;;  %v130_v30 = vmul.f32 %v110_v22, %v98_v18  ;;  %v131_v31 = vmul.f32 %v111_v23, %v99_v19  ;;  %v234_v32 = vadd.f32 %v98_v18, %v97_v17 }
   0xc   :  { %272 = vpow2.f32 %v113_v25  ;;  %v132_v33 = vmul.f32 %v112_v24, %v100_v20 }
   0xd   :  { %274 = vpow2.f32 %v115_v26  ;;  %v192_v34 = vadd.f32 %v130_v30, %v129_v28  ;;  %v235_v35 = vadd.f32 %v234_v32, %v99_v19 }
   0xe   :  { %276 = vpow2.f32 %v117_v27 }
   0xf   :  { %278 = vpow2.f32 %v119_v29  ;;  %v193_v36 = vadd.f32 %v192_v34, %v131_v31  ;;  %v236_v37 = vadd.f32 %v235_v35, %v100_v20 }
  0x11   :  { %v194_v38 = vadd.f32 %v193_v36, %v132_v33  ;;  %v237_v39 = vrot.slane %v236_v37, 4 }
  0x13   :  { %v195_v40 = vrot.slane %v194_v38, 4  ;;  %v238_v41 = vadd.f32 %v237_v39, %v236_v37 }
  0x15   :  { %v196_v42 = vadd.f32 %v195_v40, %v194_v38  ;;  %v239_v43 = vrot.slane %v238_v41, 2 }
  0x17   :  { %v197_v44 = vrot.slane %v196_v42, 2  ;;  %v240_v45 = vadd.f32 %v239_v43, %v238_v41 }
  0x19   :  { %v273_v46 = vpop.eup %272  ;;  %v198_v47 = vadd.f32 %v197_v44, %v196_v42  ;;  %v241_v51 = vrot.slane %v240_v45, 1 }
  0x1a   :  { %v275_v48 = vpop.eup %274  ;;  %v145_v49 = vmul.f32 %v273_v46, %v97_v17  ;;  %v121_v50 = vmul.f32 %v273_v46, %v93_v11 }
  0x1b   :  { %v277_v52 = vpop.eup %276  ;;  %v199_v53 = vrot.slane %v198_v47, 1  ;;  %v146_v54 = vmul.f32 %v275_v48, %v98_v18  ;;  %v122_v55 = vmul.f32 %v275_v48, %v94_v12  ;;  %v242_v60 = vadd.f32 %v241_v51, %v240_v45 }
  0x1c   :  { %v279_v56 = vpop.eup %278  ;;  %v147_v57 = vmul.f32 %v277_v52, %v99_v19  ;;  %v123_v58 = vmul.f32 %v277_v52, %v95_v13  ;;  %v161_v59 = vmul.f32 %v273_v46, %v121_v50 }
  0x1d   :  { %v200_v61 = vadd.f32 %v199_v53, %v198_v47  ;;  %v148_v62 = vmul.f32 %v279_v56, %v100_v20  ;;  %v206_v63 = vadd.f32 %v146_v54, %v145_v49  ;;  %v124_v0 = vmul.f32 %v279_v56, %v96_v14  ;;  %243 = vst [vmem:[%s344_s5] sm:$0x1] %v242_v60 }
  0x1e   :  { %v162_v1 = vmul.f32 %v275_v48, %v122_v55  ;;  %v163_v2 = vmul.f32 %v277_v52, %v123_v58 }
  0x1f   :  { %201 = vst [vmem:[%s345_s2] sm:$0x1] %v200_v61  ;;  %v207_v3 = vadd.f32 %v206_v63, %v147_v57  ;;  %v164_v4 = vmul.f32 %v279_v56, %v124_v0 }
  0x20   :  { %v220_v5 = vadd.f32 %v162_v1, %v161_v59 }
  0x21   :  { %v208_v6 = vadd.f32 %v207_v3, %v148_v62 }
  0x22   :  { %v221_v7 = vadd.f32 %v220_v5, %v163_v2 }
  0x23   :  { %v209_v8 = vrot.slane %v208_v6, 4 }
  0x24   :  { %v222_v9 = vadd.f32 %v221_v7, %v164_v4 }
  0x25   :  { %v210_v10 = vadd.f32 %v209_v8, %v208_v6 }
  0x26   :  { %v223_v11 = vrot.slane %v222_v9, 4 }
  0x27   :  { %v211_v12 = vrot.slane %v210_v10, 2 }
  0x28   :  { %v224_v13 = vadd.f32 %v223_v11, %v222_v9 }
  0x29   :  { %v212_v14 = vadd.f32 %v211_v12, %v210_v10 }
  0x2a   :  { %v225_v15 = vrot.slane %v224_v13, 2 }
  0x2b   :  { %v213_v16 = vrot.slane %v212_v14, 1 }
  0x2c   :  { %v226_v17 = vadd.f32 %v225_v15, %v224_v13 }
  0x2d   :  { %v214_v18 = vadd.f32 %v213_v16, %v212_v14 }
  0x2e   :  { %v227_v19 = vrot.slane %v226_v17, 1 }
  0x2f   :  { %215 = vst [vmem:[%s346_s3] sm:$0x1] %v214_v18 }
  0x30   :  { %v228_v20 = vadd.f32 %v227_v19, %v226_v17 }
  0x32   :  { %229 = vst [vmem:[%s347_s4] sm:$0x1] %v228_v20 }

</bundles_post_ra>
